<compile_context>
chip_gen: v7x
topology: tpu7x:2x2x1
jax: 0.10.0
libtpu: 0.0.40
codegen_flags: <defaults>
</compile_context>

<pallas_src>
import math

import jax
import jax.numpy as jnp
from jax.experimental import pallas as pl
from jax.experimental.pallas import tpu as pltpu


def _round_up(x: int, m: int) -> int:
    return ((x + m - 1) // m) * m


def _fused_array_output_kernel(x_ref, w1_ref, b1_ref, w2_ref, b2_ref, o_ref, acc_ref):
    """Fused feature-extractor + projection-head hot path.

    Grid = (M tiles, K tiles).  The feature-extractor matmul is accumulated
    over the K (F_in) axis into an f32 VMEM scratch; the projection matmul and
    the output store happen only on the final K step.
    """
    k = pl.program_id(1)

    @pl.when(k == 0)
    def _():
        acc_ref[...] = jnp.zeros_like(acc_ref)

    # Feature extractor partial: (tm, tk)bf16 @ (tk, hidden)bf16 -> f32 acc.
    acc_ref[...] += jnp.dot(
        x_ref[...], w1_ref[...], preferred_element_type=jnp.float32
    )

    @pl.when(k == pl.num_programs(1) - 1)
    def _():
        feat = acc_ref[...] + b1_ref[...]                # f32 bias add
        feat_bf16 = feat.astype(jnp.bfloat16)            # bf16 MXU path
        out = jnp.dot(feat_bf16, w2_ref[...], preferred_element_type=jnp.float32)
        out = out + b2_ref[...]
        o_ref[...] = out.astype(o_ref.dtype)


def array_output_wrapper_forward(
    x,
    params,
    *,
    target_shape,
    output_name,
    tm_max: int = 128,
    tk_max: int = 512,
):
    """JAX wrapper mirroring ArrayOutputWrapperModule.forward."""
    w1, b1, w2, b2 = params
    B = x.shape[0]
    target_width = math.prod(target_shape)
    F_in, hidden = w1.shape

    # Slice projection weights to target_width BEFORE the kernel so we never
    # compute / write columns that would be discarded afterwards.
    w2 = w2[:, :target_width]
    b2 = b2[:, :target_width]
    T = target_width

    # Glue: flatten NCHW -> (B, F_in); cast streaming operands to bf16
    # (f32 accumulation happens inside the kernel).
    x_flat = x.reshape(B, -1).astype(jnp.bfloat16)
    w1_bf16 = w1.astype(jnp.bfloat16)
    w2_bf16 = w2.astype(jnp.bfloat16)
    b1_f32 = b1.reshape(1, hidden).astype(jnp.float32)
    b2_f32 = b2.reshape(1, T).astype(jnp.float32)

    # --- Tile plan (v7x-safe: modest K slabs, lane-dense output) -------------
    tm = min(tm_max, _round_up(B, 8))           # sublane-aligned M tile
    tk = min(tk_max, _round_up(F_in, 128))      # lane-aligned K tile, <= 512

    B_pad = _round_up(B, tm)
    K_pad = _round_up(F_in, tk)

    if B_pad != B or K_pad != F_in:
        x_flat = jnp.pad(x_flat, ((0, B_pad - B), (0, K_pad - F_in)))
    if K_pad != F_in:
        w1_bf16 = jnp.pad(w1_bf16, ((0, K_pad - F_in), (0, 0)))

    grid = (B_pad // tm, K_pad // tk)

    flops = 2 * B_pad * K_pad * hidden + 2 * B_pad * hidden * T
    bytes_accessed = (
        x_flat.size * 2
        + w1_bf16.size * 2
        + w2_bf16.size * 2
        + b1_f32.size * 4
        + b2_f32.size * 4
        + B_pad * T * 4
    )

    out_flat = pl.pallas_call(
        _fused_array_output_kernel,
        out_shape=jax.ShapeDtypeStruct((B_pad, T), jnp.float32),
        grid_spec=pltpu.PrefetchScalarGridSpec(
            num_scalar_prefetch=0,
            grid=grid,
            in_specs=[
                pl.BlockSpec((tm, tk), lambda i, k: (i, k)),        # x tile
                pl.BlockSpec((tk, hidden), lambda i, k: (k, 0)),    # w1 K-slab
                pl.BlockSpec((1, hidden), lambda i, k: (0, 0)),     # b1 (resident)
                pl.BlockSpec((hidden, T), lambda i, k: (0, 0)),     # w2 (resident)
                pl.BlockSpec((1, T), lambda i, k: (0, 0)),          # b2 (resident)
            ],
            # Same output block across the K axis -> f32 tile stays VMEM-resident,
            # single HBM writeback per (i) tile.
            out_specs=pl.BlockSpec((tm, T), lambda i, k: (i, 0)),
            scratch_shapes=[pltpu.VMEM((tm, hidden), jnp.float32)],
        ),
        compiler_params=pltpu.CompilerParams(
            dimension_semantics=("parallel", "arbitrary"),
            vmem_limit_bytes=64 * 1024 * 1024,
        ),
        cost_estimate=pl.CostEstimate(
            flops=flops, transcendentals=0, bytes_accessed=bytes_accessed
        ),
    )(x_flat, w1_bf16, b1_f32, w2_bf16, b2_f32)

    # Drop batch padding, take target_width, reshape to target shape (glue).
    out = out_flat[:B, :target_width].reshape(-1, *target_shape)
    return {output_name: out}


if __name__ == "__main__":
    # Small shapes consistent with the module:
    #   x: (B=2, C=4, H=16, W=16)  -> flattened feature-extractor input of 1024
    #   feature_extractor.num_out_features = 128
    #   target_shape = (4, 8, 8)   -> target_width = 256
    B, C, H, W = 2, 4, 16, 16
    F_IN = C * H * W
    NUM_OUT_FEATURES = 128
    TARGET_SHAPE = (4, 8, 8)
    TARGET_WIDTH = math.prod(TARGET_SHAPE)

    key = jax.random.PRNGKey(0)
    k_w1, k_w2, k_x = jax.random.split(key, 3)

    # Deterministic synthetic parameter init (no checkpoint loading).
    w1 = jax.random.normal(k_w1, (F_IN, NUM_OUT_FEATURES), jnp.float32) * 0.02
    b1 = jnp.zeros((1, NUM_OUT_FEATURES), jnp.float32)
    w2 = jax.random.normal(k_w2, (NUM_OUT_FEATURES, TARGET_WIDTH), jnp.float32) * 0.02
    b2 = jnp.zeros((1, TARGET_WIDTH), jnp.float32)
    params = (w1, b1, w2, b2)

    x = jax.random.normal(k_x, (B, C, H, W), jnp.float32)

    result = array_output_wrapper_forward(
        x, params, target_shape=TARGET_SHAPE, output_name="array_output"
    )
    out = result["array_output"]
    jax.block_until_ready(out)

    # Sanity check against a pure-JAX f32 reference of the same forward pass.
    x_flat = x.reshape(B, -1)
    ref = (x_flat @ w1 + b1) @ w2 + b2
    ref = ref[:, :TARGET_WIDTH].reshape(-1, *TARGET_SHAPE)
    assert out.shape == (B, *TARGET_SHAPE)
    # bf16 operands / f32 accumulation -> loosened tolerance vs pure-f32 ref.
    assert jnp.allclose(out, ref, atol=2e-2, rtol=2e-2)

    # TODO(synk): the concrete LCL/CNNUpscale feature extractors are not
    # specified here; a dense linear stand-in with num_out_features=128 is used.
    print("KERNEL_OK")
</pallas_src>

<mosaic_0001>
module attributes {stable_mosaic.version = 11 : i64} {
  func.func @_fused_array_output_kernel(%arg0: i32, %arg1: i32, %arg2: memref<8x512xbf16, #tpu.memory_space<vmem>>, %arg3: memref<512x128xbf16, #tpu.memory_space<vmem>>, %arg4: memref<1x128xf32, #tpu.memory_space<vmem>>, %arg5: memref<128x256xbf16, #tpu.memory_space<vmem>>, %arg6: memref<1x256xf32, #tpu.memory_space<vmem>>, %arg7: memref<8x256xf32, #tpu.memory_space<vmem>>, %arg8: memref<8x128xf32, #tpu.memory_space<vmem>>) attributes {dimension_semantics = [#tpu.dimension_semantics<parallel>, #tpu.dimension_semantics<arbitrary>], iteration_bounds = array<i64: 1, 2>, scalar_prefetch = 0 : i64, scratch_operands = 1 : i64, tpu.core_type = #tpu.core_type<tc>, window_params = [{transform_indices = @transform_0, window_bounds = array<i64: 8, 512>}, {transform_indices = @transform_1, window_bounds = array<i64: 512, 128>}, {pipeline_mode = #tpu.pipeline_mode<synchronous>, transform_indices = @transform_2, window_bounds = array<i64: 1, 128>}, {pipeline_mode = #tpu.pipeline_mode<synchronous>, transform_indices = @transform_3, window_bounds = array<i64: 128, 256>}, {pipeline_mode = #tpu.pipeline_mode<synchronous>, transform_indices = @transform_4, window_bounds = array<i64: 1, 256>}, {transform_indices = @transform_5, window_bounds = array<i64: 8, 256>}]} {
    %c0_i32 = arith.constant 0 : i32
    %0 = arith.cmpi eq, %arg1, %c0_i32 : i32
    %1 = arith.extui %0 : i1 to i32
    %c0_i32_0 = arith.constant 0 : i32
    %2 = arith.cmpi ne, %1, %c0_i32_0 : i32
    scf.if %2 {
      %cst_9 = arith.constant 0.000000e+00 : f32
      %12 = vector.broadcast %cst_9 : f32 to vector<8x128xf32>
      %c0_10 = arith.constant 0 : index
      %c0_11 = arith.constant 0 : index
      %13 = vector.load %arg8[%c0_10, %c0_11] : memref<8x128xf32, #tpu.memory_space<vmem>>, vector<8x128xf32>
      tpu.vector_store %arg8[%c0_10, %c0_11], %12 {strides = array<i32>} : memref<8x128xf32, #tpu.memory_space<vmem>>, vector<8x128xf32>,
    } else {
    }
    %c0 = arith.constant 0 : index
    %c0_1 = arith.constant 0 : index
    %3 = vector.load %arg8[%c0, %c0_1] : memref<8x128xf32, #tpu.memory_space<vmem>>, vector<8x128xf32>
    %c0_2 = arith.constant 0 : index
    %c0_3 = arith.constant 0 : index
    %4 = vector.load %arg2[%c0_2, %c0_3] : memref<8x512xbf16, #tpu.memory_space<vmem>>, vector<8x512xbf16>
    %c0_4 = arith.constant 0 : index
    %c0_5 = arith.constant 0 : index
    %5 = vector.load %arg3[%c0_4, %c0_5] : memref<512x128xbf16, #tpu.memory_space<vmem>>, vector<512x128xbf16>
    %cst = arith.constant dense<0.000000e+00> : vector<8x128xf32>
    %6 = tpu.matmul %4, %5, %cst {dimension_numbers = #tpu.dot_dimension_numbers<[1], [0], [0], [1], [0, 0, 1, 1], [], []>} : vector<8x512xbf16>, vector<512x128xbf16>, vector<8x128xf32> -> vector<8x128xf32>
    %7 = arith.addf %3, %6 : vector<8x128xf32>
    %c0_6 = arith.constant 0 : index
    %c0_7 = arith.constant 0 : index
    %8 = vector.load %arg8[%c0_6, %c0_7] : memref<8x128xf32, #tpu.memory_space<vmem>>, vector<8x128xf32>
    tpu.vector_store %arg8[%c0_6, %c0_7], %7 {strides = array<i32>} : memref<8x128xf32, #tpu.memory_space<vmem>>, vector<8x128xf32>,
    %c1_i32 = arith.constant 1 : i32
    %9 = arith.cmpi eq, %arg1, %c1_i32 : i32
    %10 = arith.extui %9 : i1 to i32
    %c0_i32_8 = arith.constant 0 : i32
    %11 = arith.cmpi ne, %10, %c0_i32_8 : i32
    scf.if %11 {
      %c0_9 = arith.constant 0 : index
      %c0_10 = arith.constant 0 : index
      %12 = vector.load %arg8[%c0_9, %c0_10] : memref<8x128xf32, #tpu.memory_space<vmem>>, vector<8x128xf32>
      %c0_11 = arith.constant 0 : index
      %c0_12 = arith.constant 0 : index
      %13 = vector.load %arg4[%c0_11, %c0_12] : memref<1x128xf32, #tpu.memory_space<vmem>>, vector<1x128xf32>
      %14 = vector.broadcast %13 : vector<1x128xf32> to vector<8x128xf32>
      %15 = arith.addf %12, %14 : vector<8x128xf32>
      %16 = arith.truncf %15 : vector<8x128xf32> to vector<8x128xbf16>
      %c0_13 = arith.constant 0 : index
      %c0_14 = arith.constant 0 : index
      %17 = vector.load %arg5[%c0_13, %c0_14] : memref<128x256xbf16, #tpu.memory_space<vmem>>, vector<128x256xbf16>
      %cst_15 = arith.constant dense<0.000000e+00> : vector<8x256xf32>
      %18 = tpu.matmul %16, %17, %cst_15 {dimension_numbers = #tpu.dot_dimension_numbers<[1], [0], [0], [1], [0, 0, 1, 1], [], []>} : vector<8x128xbf16>, vector<128x256xbf16>, vector<8x256xf32> -> vector<8x256xf32>
      %c0_16 = arith.constant 0 : index
      %c0_17 = arith.constant 0 : index
      %19 = vector.load %arg6[%c0_16, %c0_17] : memref<1x256xf32, #tpu.memory_space<vmem>>, vector<1x256xf32>
      %20 = vector.broadcast %19 : vector<1x256xf32> to vector<8x256xf32>
      %21 = arith.addf %18, %20 : vector<8x256xf32>
      %c0_18 = arith.constant 0 : index
      %c0_19 = arith.constant 0 : index
      %22 = vector.load %arg7[%c0_18, %c0_19] : memref<8x256xf32, #tpu.memory_space<vmem>>, vector<8x256xf32>
      tpu.vector_store %arg7[%c0_18, %c0_19], %21 {strides = array<i32>} : memref<8x256xf32, #tpu.memory_space<vmem>>, vector<8x256xf32>,
    } else {
    }
    return
  }
  func.func @transform_0(%arg0: i32, %arg1: i32) -> (i32, i32) {
    %c0_i32 = arith.constant 0 : i32
    return %arg0, %arg1 : i32, i32
  }
  func.func @transform_1(%arg0: i32, %arg1: i32) -> (i32, i32) {
    %c0_i32 = arith.constant 0 : i32
    %c0_i32_0 = arith.constant 0 : i32
    return %arg1, %c0_i32 : i32, i32
  }
  func.func @transform_2(%arg0: i32, %arg1: i32) -> (i32, i32) {
    %c0_i32 = arith.constant 0 : i32
    %c0_i32_0 = arith.constant 0 : i32
    %c0_i32_1 = arith.constant 0 : i32
    return %c0_i32, %c0_i32_0 : i32, i32
  }
  func.func @transform_3(%arg0: i32, %arg1: i32) -> (i32, i32) {
    %c0_i32 = arith.constant 0 : i32
    %c0_i32_0 = arith.constant 0 : i32
    %c0_i32_1 = arith.constant 0 : i32
    return %c0_i32, %c0_i32_0 : i32, i32
  }
  func.func @transform_4(%arg0: i32, %arg1: i32) -> (i32, i32) {
    %c0_i32 = arith.constant 0 : i32
    %c0_i32_0 = arith.constant 0 : i32
    %c0_i32_1 = arith.constant 0 : i32
    return %c0_i32, %c0_i32_0 : i32, i32
  }
  func.func @transform_5(%arg0: i32, %arg1: i32) -> (i32, i32) {
    %c0_i32 = arith.constant 0 : i32
    %c0_i32_0 = arith.constant 0 : i32
    return %arg0, %c0_i32 : i32, i32
  }
}

</mosaic_0001>

<bundles_post_ra>
// kernel: tpu_custom_call.1
= control target key start
LH: loop header
LB: loop body
LE: loop exit
PB: predicated region body
PF: predicated region fallthrough
CT: control target
= control target key end

     0   :  { %10 = vsyncpa [#allocation4], 0  ;;  %s1873_s0 = inlined_call_operand.hbm [shape: bf16[8,1024], index: 0, kind: input, shape index: {}]   ;;  %s1874_s1 = inlined_call_operand.hbm [shape: bf16[1024,128], index: 1, kind: input, shape index: {}]   ;;  %s1875_s2 = inlined_call_operand.hbm [shape: f32[1,128], index: 2, kind: input, shape index: {}]   ;;  %s1876_s3 = inlined_call_operand.hbm [shape: bf16[128,256], index: 3, kind: input, shape index: {}]   ;;  %s1877_s4 = inlined_call_operand.hbm [shape: f32[1,256], index: 4, kind: input, shape index: {}]   ;;  %s1878_s5 = inlined_call_operand.hbm [shape: f32[8,256], index: 5, kind: output, shape index: {}]  }
   0x1   :  { %12 = vsyncpa [#allocation4 + $0x1], 0 }
   0x2   :  { %13 = vsyncpa [#allocation7], 0 }
   0x3   :  { %15 = vsyncpa [#allocation7 + $0x1], 0 }
   0x4   :  { %16 = vsyncpa [#allocation10], 0 }
   0x5   :  { %17 = vsyncpa [#allocation5], 0  ;;  %s1549_s18 = smov 0   ;;  %s1551_s19 = smov 0  }
   0x6   :  { %s1553_s20 = smov 0   ;;  %s1555_s21 = smov 0  }
   0x7   :  { %s1557_s22 = smov 0   ;;  %s1559_s23 = smov 0  }
   0x8 LB: > { %s1578_s24 = sadd.s32 4294967295, %s1505_s23   ;;  %p57_p0 = scmp.ne.s32.totalorder %s1489_s19, %s1485_s18  ;;  %s1505_s23 = sphi %s1559_s23, %s23_s23   ;;  %s1501_s22 = sphi %s1557_s22, %s1897_s22   ;;  %s1497_s21 = sphi %s1555_s21, %s1896_s21   ;;  %s1493_s20 = sphi %s1553_s20, %s1895_s20   ;;  %s1489_s19 = sphi %s1551_s19, %s1894_s19   ;;  %s1485_s18 = sphi %s1549_s18, %s1893_s18  }
   0x9   : > { %p1879_p1 = scmp.eq.s32.totalorder %s1578_s24, 0  ;;  %p983_p2 = scmp.ge.s32.totalorder %s1505_s23, 1 }
   0xa   : > { %p183_p3 = scmp.lt.s32.totalorder %s1505_s23, 3  ;;  %s1507_s27 = smov [#allocation8]  }
   0xb   : > { %p1586_p4 = por %p1879_p1, %p57_p0  ;;  %s196_s28 = sshll.u32 %s1507_s27, 4  ;;  %s197_s28 = int_to_ptr.vmem [resolvable:$true] %s196_s28 }
   0xc   : > { %p1590_p5 = pnand %p983_p2, %p183_p3  ;;  %s1508_s29 = smov [#allocation9]  }
   0xd   : > { %s1882_s25 = scalar_select %p1586_p4, 1, 0 }
   0xe   : > { %s1883_s26 = scalar_select %p1590_p5, 1, 0 }
   0xf   : > { %p1125_p6 = pneg %p1590_p5  ;;  %s206_s30 = sshll.u32 %s1508_s29, 4  ;;  %s1602_s30 = int_to_ptr.vmem [resolvable:$true] %s206_s30 }
  0x10   : > { %s1509_s7 = smov [#allocation11]   ;;  %s1269_s11 = scalar_lea.hbm %s1875_s2, 16 }
  0x11   : > { %p1598_p7 = pnand %p1125_p6, %p1879_p1  ;;  %s1604_s8 = sshll.u32 %s1509_s7, 4  ;;  %s221_s8 = int_to_ptr.vmem [resolvable:$true] %s1604_s8 }
  0x12   : > { %p1270_p8 = scmp.ne.s32.totalorder %s1875_s2, %s1269_s11  ;;  %p1276_p12 = scmp.lt.u32.totalorder %s1269_s11, %s1875_s2 }
  0x13   : > { %p1614_p9 = pneg %p1598_p7 }
  0x15   : > { %p1272_p10 = pnand %p1614_p9, %p1270_p8 }
  0x17   : > { %p1273_p11 = pneg %p1272_p10 }
  0x19   : > { %p1278_p13 = pnand %p1276_p12, %p1273_p11 }
  0x1b   : > { %1281 = shalt.err (!%p1278_p13)
}
  0x1c   : > { %s1282_s17 = scalar_lea.vmem %s197_s28, 16  ;;  %s1289_s18 = scalar_lea.vmem %s197_s28, 32 }
  0x1d   : > { %p1283_p0 = scmp.ne.s32.totalorder %s197_s28, %s1282_s17  ;;  %p1290_p6 = scmp.lt.s32.totalorder %s197_s28, %s197_s28 }
  0x1e   : > { %p1291_p1 = scmp.lt.s32.totalorder %s1289_s18, %s1282_s17 }
  0x1f   : > { %p1285_p2 = pnand %p1283_p0, %p1614_p9 }
  0x20   : > { %p1292_p4 = por %p1291_p1, %p1290_p6 }
  0x21   : > { %p1286_p3 = pneg %p1285_p2 }
  0x23   : > { %p1293_p5 = pnand %p1292_p4, %p1286_p3 }
  0x25   : > { %1296 = shalt.err (!%p1293_p5)
}
  0x26   : > { %1128 = dma.hbm_to_vmem [thread:$0]  (!%p1598_p7), %s1875_s2, 16, %s197_s28, [#allocation7]  }
  0x27   : > { %s1297_s10 = scalar_lea.hbm %s1876_s3, 2048 }
  0x28   : > { %p1298_p8 = scmp.ne.s32.totalorder %s1876_s3, %s1297_s10  ;;  %p1304_p4 = scmp.lt.u32.totalorder %s1297_s10, %s1876_s3 }
  0x2a   : > { %p1300_p10 = pnand %p1298_p8, %p1614_p9 }
  0x2c   : > { %p1301_p1 = pneg %p1300_p10 }
  0x2e   : > { %p1306_p5 = pnand %p1304_p4, %p1301_p1 }
  0x30   : > { %1309 = shalt.err (!%p1306_p5)
}
  0x31   : > { %s1310_s28 = scalar_lea.vmem %s1602_s30, 2048  ;;  %p1318_p0 = scmp.lt.s32.totalorder %s1602_s30, %s1602_s30 }
  0x32   : > { %p1311_p11 = scmp.ne.s32.totalorder %s1602_s30, %s1310_s28  ;;  %p1319_p2 = scmp.lt.s32.totalorder %s1310_s28, %s1310_s28 }
  0x34   : > { %p1313_p12 = pnand %p1311_p11, %p1614_p9  ;;  %p1320_p3 = por %p1319_p2, %p1318_p0 }
  0x36   : > { %p1314_p13 = pneg %p1313_p12 }
  0x38   : > { %p1321_p6 = pnand %p1320_p3, %p1314_p13 }
  0x3a   : > { %1324 = shalt.err (!%p1321_p6)
}
  0x3b   : > { %s1510_s16 = smov 128   ;;  %s1511_s17 = smov 8  }
  0x3c   : > { %1131 = dma.hbm_to_vmem [thread:$0]  (!%p1598_p7), %s1876_s3, 2048, %s1602_s30, [#allocation10], %s1510_s16, %s1510_s16, %s1511_s17  }
  0x3d   : > { %s1325_s9 = scalar_lea.hbm %s1877_s4, 32 }
  0x3e   : > { %p1326_p8 = scmp.ne.s32.totalorder %s1877_s4, %s1325_s9  ;;  %p1332_p4 = scmp.lt.u32.totalorder %s1325_s9, %s1877_s4 }
  0x40   : > { %p1328_p10 = pnand %p1326_p8, %p1614_p9 }
  0x42   : > { %p1329_p1 = pneg %p1328_p10 }
  0x44   : > { %p1334_p5 = pnand %p1332_p4, %p1329_p1 }
  0x46   : > { %1337 = shalt.err (!%p1334_p5)
}
  0x47   : > { %s1338_s15 = scalar_lea.vmem %s221_s8, 32  ;;  %p1346_p0 = scmp.lt.s32.totalorder %s221_s8, %s221_s8 }
  0x48   : > { %p1339_p11 = scmp.ne.s32.totalorder %s221_s8, %s1338_s15  ;;  %p1347_p2 = scmp.lt.s32.totalorder %s1338_s15, %s1338_s15 }
  0x4a   : > { %p1341_p12 = pnand %p1339_p11, %p1614_p9  ;;  %p1348_p3 = por %p1347_p2, %p1346_p0 }
  0x4c   : > { %p1342_p13 = pneg %p1341_p12 }
  0x4e   : > { %p1349_p6 = pnand %p1348_p3, %p1342_p13 }
  0x50   : > { %1352 = shalt.err (!%p1349_p6)
}
  0x51   : > { %1134 = dma.hbm_to_vmem [thread:$0]  (!%p1598_p7), %s1877_s4, 32, %s221_s8, [#allocation10]  }
  0x52   : > { %s44_s14 = sadd.s32 1, %s1493_s20  ;;  %s32_s16 = sadd.s32 1, %s1501_s22 }
  0x53   : > { %p51_p9 = scmp.ne.s32.totalorder %s1493_s20, %s1489_s19  ;;  %p33_p8 = scmp.ge.s32.totalorder %s32_s16, 2 }
  0x54   : > { %p52_p10 = scmp.eq.s32.totalorder %s1505_s23, 0  ;;  %p1145_p1 = scmp.lt.s32.totalorder %s1505_s23, 2 }
  0x55   : > { %s1679_s6 = sand.u32 1, %s1493_s20   ;;  %s1899_s16 = smov (%p33_p8, %s32_s16), 0 }
  0x56   : > { %p53_p4 = por %p52_p10, %p51_p9  ;;  %s40_s17 = ssub.s32 %s1501_s22, %s1899_s16 }
  0x57   : > { %s988_s8 = sshll.u32 %s1679_s6, 4  ;;  %p42_p7 = scmp.eq.s32.totalorder %s40_s17, 0 }
  0x58   : > { %s1059_s18 = sshll.u32 %s1501_s22, 8  ;;  %s235_s27 = scalar_lea.vmem [#allocation3], %s988_s8 }
  0x59   : > { %s245_s29 = sshll.u32 %s235_s27, 4  ;;  %s1693_s11 = scalar_lea.hbm %s1873_s0, %s1059_s18  ;;  %s1695_s29 = int_to_ptr.vmem [resolvable:$true] %s245_s29 }
  0x5a   : > { %s1688_s7 = scalar_select %p42_p7, %s1493_s20, %s44_s14  }
  0x5b   : > { %p1699_p5 = pnand %p1145_p1, %p53_p4  ;;  %s991_s13 = sshll.u32 %s1679_s6, 8 }
  0x5c   : > { %s1060_s15 = sshll.u32 %s1501_s22, 12  ;;  %s1705_s30 = scalar_lea.vmem [#allocation6], %s991_s13 }
  0x5d   : > { %s263_s28 = sshll.u32 %s1705_s30, 4  ;;  %s232_s14 = scalar_lea.sflag [#allocation4], %s1679_s6  ;;  %s1736_s28 = int_to_ptr.vmem [resolvable:$true] %s263_s28 }
  0x5e   : > { %s1353_s17 = scalar_lea.hbm %s1693_s11, 256  ;;  %p1355_p12 = pneg %p1699_p5 }
  0x5f   : > { %p1354_p11 = scmp.ne.s32.totalorder %s1693_s11, %s1353_s17  ;;  %s1358_s27 = scalar_lea.hbm %s1873_s0, 512 }
  0x60   : > { %p1359_p2 = scmp.lt.u32.totalorder %s1693_s11, %s1873_s0  ;;  %p1360_p3 = scmp.lt.u32.totalorder %s1358_s27, %s1353_s17 }
  0x61   : > { %p1356_p13 = pnand %p1355_p12, %p1354_p11  ;;  %p1362_p9 = scmp.lt.u32.totalorder %s1353_s17, %s1693_s11 }
  0x62   : > { %p1361_p6 = por %p1360_p3, %p1359_p2 }
  0x63   : > { %p1357_p0 = pneg %p1356_p13 }
  0x64   : > { %p1363_p8 = por %p1362_p9, %p1361_p6 }
  0x66   : > { %p1364_p10 = pnand %p1363_p8, %p1357_p0 }
  0x68   : > { %1367 = shalt.err (!%p1364_p10)
}
  0x69   : > { %s1368_s6 = scalar_lea.vmem %s1695_s29, 256  ;;  %s1512_s13 = smov [#allocation3]  }
  0x6a   : > { %p1369_p1 = scmp.ne.s32.totalorder %s1695_s29, %s1368_s6  ;;  %s1373_s8 = sshll.u32 %s1512_s13, 4  ;;  %s1374_s8 = int_to_ptr.vmem [resolvable:$false] %s1373_s8 }
  0x6b   : > { %s1375_s18 = scalar_lea.vmem %s1374_s8, 512  ;;  %p1376_p11 = scmp.lt.s32.totalorder %s1695_s29, %s1374_s8 }
  0x6c   : > { %p1371_p4 = pnand %p1369_p1, %p1355_p12  ;;  %p1377_p13 = scmp.lt.s32.totalorder %s1375_s18, %s1368_s6 }
  0x6e   : > { %p1372_p7 = pneg %p1371_p4  ;;  %p1378_p2 = por %p1377_p13, %p1376_p11 }
  0x70   : > { %p1379_p3 = pnand %p1378_p2, %p1372_p7 }
  0x72   : > { %1382 = shalt.err (!%p1379_p3)
}
  0x73   : > { %1138 = dma.hbm_to_vmem [thread:$0]  (!%p1699_p5), %s1693_s11, 256, %s1695_s29, %s232_s14  }
  0x74   : > { %s252_s17 = sand.u32 1, %s1505_s23   ;;  %s1744_s10 = scalar_lea.hbm %s1874_s1, %s1060_s15 }
  0x75   : > { %s1746_s6 = scalar_lea.sflag [#allocation7], %s252_s17  ;;  %s1383_s13 = scalar_lea.hbm %s1744_s10, 4096 }
  0x76   : > { %p1384_p0 = scmp.ne.s32.totalorder %s1744_s10, %s1383_s13  ;;  %s1388_s30 = scalar_lea.hbm %s1874_s1, 8192 }
  0x77   : > { %p1389_p8 = scmp.lt.u32.totalorder %s1744_s10, %s1874_s1  ;;  %p1390_p10 = scmp.lt.u32.totalorder %s1388_s30, %s1383_s13 }
  0x78   : > { %p1386_p6 = pnand %p1384_p0, %p1355_p12  ;;  %p1392_p4 = scmp.lt.u32.totalorder %s1383_s13, %s1744_s10 }
  0x79   : > { %p1391_p1 = por %p1390_p10, %p1389_p8 }
  0x7a   : > { %p1387_p9 = pneg %p1386_p6 }
  0x7b   : > { %p1393_p7 = por %p1392_p4, %p1391_p1 }
  0x7d   : > { %p1394_p11 = pnand %p1393_p7, %p1387_p9 }
  0x7f   : > { %1397 = shalt.err (!%p1394_p11)
}
  0x80   : > { %s1398_s15 = scalar_lea.vmem %s1736_s28, 4096  ;;  %s1513_s18 = smov [#allocation6]  }
  0x81   : > { %p1399_p13 = scmp.ne.s32.totalorder %s1736_s28, %s1398_s15  ;;  %s1403_s17 = sshll.u32 %s1513_s18, 4  ;;  %s1404_s17 = int_to_ptr.vmem [resolvable:$false] %s1403_s17 }
  0x82   : > { %s1405_s27 = scalar_lea.vmem %s1404_s17, 8192  ;;  %p1406_p0 = scmp.lt.s32.totalorder %s1736_s28, %s1404_s17 }
  0x83   : > { %p1401_p2 = pnand %p1399_p13, %p1355_p12  ;;  %p1407_p6 = scmp.lt.s32.totalorder %s1405_s27, %s1398_s15 }
  0x85   : > { %p1402_p3 = pneg %p1401_p2  ;;  %p1408_p8 = por %p1407_p6, %p1406_p0 }
  0x87   : > { %p1409_p10 = pnand %p1408_p8, %p1402_p3 }
  0x89   : > { %1412 = shalt.err (!%p1409_p10)
}
  0x8a   : > { %s1514_s9 = smov 64   ;;  %s1515_s13 = smov 4  }
  0x8b   : > { %1141 = dma.hbm_to_vmem [thread:$0]  (!%p1699_p5), %s1744_s10, 4096, %s1736_s28, %s1746_s6, %s1514_s9, %s1514_s9, %s1515_s13  }
  0x8c   : > { %p1887_p12 = scmp.ne.s32.totalorder %s1883_s26, 0 }
  0x8d   : > { %s277_s29 = sand.u32 (!%p1887_p12), 1, %s1489_s19   ;;  %p1888_p9 = scmp.ne.s32.totalorder (!%p1887_p12), %s1882_s25, 0 }
  0x8e   : > { %275 = sbr.rel (%p1887_p12) target bundleno = 676 (0x2a4), region = 40  ;;  %s995_s11 = sshll.u32 (!%p1887_p12), %s277_s29, 4 }
  0x8f   : > { %s278_s30 = scalar_lea.sflag (!%p1887_p12), [#allocation4], %s277_s29  ;;  %s1775_s14 = scalar_lea.vmem (!%p1887_p12), [#allocation3], %s995_s11 }
  0x95   : > { %1464 = dma.done.wait (%p1888_p9), %s278_s30, 256  }
  0x96   : > { %1466 = vsyncadd (%p1888_p9), %s278_s30, 4294967040  ;;  %s286_s8 = sand.u32 1, %s1578_s24   ;;  %s996_s12 = sshll.u32 %s277_s29, 8 }
  0x97   : > { %s287_s28 = scalar_lea.sflag [#allocation7], %s286_s8  ;;  %s1782_s10 = scalar_lea.vmem [#allocation6], %s996_s12 }
  0x98   : > { %1468 = dma.done.wait (%p1888_p9), %s287_s28, 4096  }
  0x99   : > { %1470 = vsyncadd (%p1888_p9), %s287_s28, 4294963200  ;;  %p1889_p5 = scmp.eq.s32.totalorder %s1578_s24, 0 }
  0x9b   : > { %1472 = dma.done.wait (%p1889_p5), [#allocation7], 16   ;;  %p1890_p1 = pmov %p1889_p5 }
  0x9d   : > { %1474 = vsyncadd (%p1890_p1), [#allocation7], 4294967280  ;;  %p1891_p4 = pmov %p1890_p1 }
  0x9e   : > { %p1892_p7 = pmov %p1890_p1 }
  0x9f   : > { %1476 = dma.done.wait (%p1891_p4), [#allocation10], 2080  }
  0xa0   : > { %1478 = vsyncadd (%p1892_p7), [#allocation10], 4294965216  ;;  %p1000_p11 = scmp.ne.s32.totalorder %s1497_s21, 0 }
  0xa1   : > { %v1516_v0 = vmov (!%p1000_p11), 0.0  }
  0xa2   : > { %335 = sbr.rel (%p1000_p11) target bundleno = 169 (0xa9), region = 64  ;;  %336 = vst [vmem:[#allocation2] sm:$0xff] (!%p1000_p11), %v1516_v0 }
  0xa9 PF: > { %v1209_v1 = vld [vmem:[%s1782_s10 + $0x40] sm:$0xff]   ;;  %v1213_v5 = vld [vmem:[%s1782_s10 + $0x48] sm:$0xff]   ;;  %v1217_v9 = vld [vmem:[%s1782_s10 + $0x50] sm:$0xff]   ;;  %p1037_p13 = scmp.ne.s32.totalorder %s1497_s21, 1 }
  0xaa   : > { %v1210_v2 = vld [vmem:[%s1782_s10 + $0xc0] sm:$0xff]   ;;  %1061 = vmatprep.subr.bf16.mxu0 %v1209_v1  ;;  %v1214_v6 = vld [vmem:[%s1782_s10 + $0xc8] sm:$0xff]   ;;  %v1218_v10 = vld [vmem:[%s1782_s10 + $0xd0] sm:$0xff]   ;;  %v1517_v54 = vmov (!%p1037_p13), 0  }
  0xab   : > { %v1211_v3 = vld [vmem:[%s1782_s10] sm:$0xff]   ;;  %1083 = vmatprep.subr.bf16.mxu1 %v1210_v2  ;;  %v1215_v7 = vld [vmem:[%s1782_s10 + $0x8] sm:$0xff]   ;;  %v1219_v11 = vld [vmem:[%s1782_s10 + $0x10] sm:$0xff]  }
  0xac   : > { %v1212_v4 = vld [vmem:[%s1782_s10 + $0x80] sm:$0xff]   ;;  %1062 = vmatpush3.bf16.msra.mxu0 %v1211_v3  ;;  %v1216_v8 = vld [vmem:[%s1782_s10 + $0x88] sm:$0xff]   ;;  %v1220_v12 = vld [vmem:[%s1782_s10 + $0x90] sm:$0xff]  }
  0xad   : > { %1084 = vmatpush3.bf16.msra.mxu1 %v1212_v4  ;;  %1063 = vmatprep.subr.bf16.mxu0 %v1213_v5  ;;  %v1221_v13 = vld [vmem:[%s1782_s10 + $0x58] sm:$0xff]   ;;  %v1225_v17 = vld [vmem:[%s1782_s10 + $0x60] sm:$0xff]   ;;  %v1229_v21 = vld [vmem:[%s1782_s10 + $0x68] sm:$0xff]  }
  0xae   : > { %1085 = vmatprep.subr.bf16.mxu1 %v1214_v6  ;;  %v1222_v14 = vld [vmem:[%s1782_s10 + $0xd8] sm:$0xff]   ;;  %v1226_v18 = vld [vmem:[%s1782_s10 + $0xe0] sm:$0xff]   ;;  %v1230_v22 = vld [vmem:[%s1782_s10 + $0xe8] sm:$0xff]  }
  0xaf   : > { %v1223_v15 = vld [vmem:[%s1782_s10 + $0x18] sm:$0xff]   ;;  %v1227_v19 = vld [vmem:[%s1782_s10 + $0x20] sm:$0xff]   ;;  %v1231_v23 = vld [vmem:[%s1782_s10 + $0x28] sm:$0xff]  }
  0xb0   : > { %1064 = vmatpush3.bf16.msra.mxu0 %v1215_v7  ;;  %v1224_v16 = vld [vmem:[%s1782_s10 + $0x98] sm:$0xff]   ;;  %v1228_v20 = vld [vmem:[%s1782_s10 + $0xa0] sm:$0xff]   ;;  %v1232_v24 = vld [vmem:[%s1782_s10 + $0xa8] sm:$0xff]  }
  0xb1   : > { %1086 = vmatpush3.bf16.msra.mxu1 %v1216_v8  ;;  %1065 = vmatprep.subr.bf16.mxu0 %v1217_v9  ;;  %v1233_v25 = vld [vmem:[%s1782_s10 + $0x70] sm:$0xff]   ;;  %v1237_v29 = vld [vmem:[%s1782_s10 + $0x78] sm:$0xff]   ;;  %v1247_v53 = vld [vmem:[#allocation9] ss:$8 sps:$4 sm:$0xff] (!%p1037_p13)   ;;  %v724_v9 = vlaneseq (!%p1037_p13) }
  0xb2   : > { %1087 = vmatprep.subr.bf16.mxu1 %v1218_v10  ;;  %v1234_v26 = vld [vmem:[%s1782_s10 + $0xf0] sm:$0xff]   ;;  %v1238_v30 = vld [vmem:[%s1782_s10 + $0xf8] sm:$0xff]   ;;  %v1253_v58 = vld [vmem:[#allocation9 + $0x20] ss:$8 sps:$4 sm:$0xff] (!%p1037_p13)  }
  0xb3   : > { %v1235_v27 = vld [vmem:[%s1782_s10 + $0x30] sm:$0xff]   ;;  %v1239_v31 = vld [vmem:[%s1782_s10 + $0x38] sm:$0xff]   ;;  %v1259_v62 = vld [vmem:[#allocation9 + $0x40] ss:$8 sps:$4 sm:$0xff] (!%p1037_p13)   ;;  %v725_v10 = vshrl.u32 (!%p1037_p13), %v724_v9, 7 }
  0xb4   : > { %1066 = vmatpush3.bf16.msra.mxu0 %v1219_v11  ;;  %v1236_v28 = vld [vmem:[%s1782_s10 + $0xb0] sm:$0xff]   ;;  %v1240_v32 = vld [vmem:[%s1782_s10 + $0xb8] sm:$0xff]   ;;  %v1265_v2 = vld [vmem:[#allocation9 + $0x60] ss:$8 sps:$4 sm:$0xff] (!%p1037_p13)  }
  0xb5   : > { %1088 = vmatpush3.bf16.msra.mxu1 %v1220_v12  ;;  %1067 = vmatprep.subr.bf16.mxu0 %v1221_v13  ;;  %v338_v33 = vld [vmem:[%s1775_s14] sm:$0xff]  ;;  %v339_v34 = vld [vmem:[%s1775_s14 + $0x8] sm:$0xff]  ;;  %v726_v11 = vsub.s32 (!%p1037_p13), 0, %v725_v10  ;;  %v730_v13 = vsub.s32 (!%p1037_p13), 1, %v725_v10 }
  0xb6   : > { %1089 = vmatprep.subr.bf16.mxu1 %v1222_v14  ;;  %v1001_v35 = vcombine.low %v338_v33, %v338_v33  ;;  %v1002_v36 = vcombine.high %v338_v33, %v338_v33  ;;  %v1003_v37 = vcombine.low %v339_v34, %v339_v34  ;;  %v1004_v38 = vcombine.high %v339_v34, %v339_v34  ;;  %v337_v47 = vld [vmem:[#allocation2] sm:$0xff]  ;;  %v1245_v52 = vld [vmem:[#allocation9 + $0x4] ss:$8 sps:$4 sm:$0xff] (!%p1037_p13)   ;;  %v1038_v4 = vld [vmem:[#allocation8] ss:$0 sm:$0xff] (!%p1037_p13) }
  0xb7   : > { %v1248_v55 = vld [vmem:[#allocation9 + $0x14] ss:$8 sps:$4 sm:$0xff] (!%p1037_p13)   ;;  %v1250_v56 = vld [vmem:[#allocation9 + $0x10] ss:$8 sps:$4 sm:$0xff] (!%p1037_p13)   ;;  %v1251_v57 = vld [vmem:[#allocation9 + $0x24] ss:$8 sps:$4 sm:$0xff] (!%p1037_p13)  }
  0xb8   : > { %1068 = vmatpush3.bf16.msra.mxu0 %v1223_v15  ;;  %642 = vmatprep.mubr.bf16.mxu0 %v1002_v36  ;;  %v1254_v59 = vld [vmem:[#allocation9 + $0x34] ss:$8 sps:$4 sm:$0xff] (!%p1037_p13)   ;;  %v1256_v60 = vld [vmem:[#allocation9 + $0x30] ss:$8 sps:$4 sm:$0xff] (!%p1037_p13)   ;;  %v1257_v61 = vld [vmem:[#allocation9 + $0x44] ss:$8 sps:$4 sm:$0xff] (!%p1037_p13)  }
  0xb9   : > { %1090 = vmatpush3.bf16.msra.mxu1 %v1224_v16  ;;  %1069 = vmatprep.subr.bf16.mxu0 %v1225_v17  ;;  %v1260_v63 = vld [vmem:[#allocation9 + $0x54] ss:$8 sps:$4 sm:$0xff] (!%p1037_p13)   ;;  %v1262_v0 = vld [vmem:[#allocation9 + $0x50] ss:$8 sps:$4 sm:$0xff] (!%p1037_p13)   ;;  %v1263_v1 = vld [vmem:[#allocation9 + $0x64] ss:$8 sps:$4 sm:$0xff] (!%p1037_p13)  }
  0xba   : > { %1091 = vmatprep.subr.bf16.mxu1 %v1226_v18  ;;  %682 = vmatprep.mubr.bf16.mxu1 %v1004_v38  ;;  %v1266_v5 = vld [vmem:[#allocation9 + $0x74] ss:$8 sps:$4 sm:$0xff] (!%p1037_p13)   ;;  %v1268_v7 = vld [vmem:[#allocation9 + $0x70] ss:$8 sps:$4 sm:$0xff] (!%p1037_p13)   ;;  %v722_v12 = vld [vmem:[#allocation11] sm:$0x3] (!%p1037_p13) }
  0xbb   : > { %v727_v14 = vrot.slane (!%p1037_p13), %v722_v12, %v726_v11  ;;  %v731_v15 = vrot.slane (!%p1037_p13), %v722_v12, %v730_v13 }
  0xbc   : > { %1070 = vmatpush3.bf16.msra.mxu0 %v1227_v19 }
  0xbd   : > { %1092 = vmatpush3.bf16.msra.mxu1 %v1228_v20  ;;  %1071 = vmatprep.subr.bf16.mxu0 %v1229_v21 }
  0xbe   : > { %1093 = vmatprep.subr.bf16.mxu1 %v1230_v22 }
  0xc0   : > { %1072 = vmatpush3.bf16.msra.mxu0 %v1231_v23 }
  0xc1   : > { %1094 = vmatpush3.bf16.msra.mxu1 %v1232_v24  ;;  %1073 = vmatprep.subr.bf16.mxu0 %v1233_v25 }
  0xc2   : > { %1095 = vmatprep.subr.bf16.mxu1 %v1234_v26 }
  0xc4   : > { %1074 = vmatpush3.bf16.msra.mxu0 %v1235_v27 }
  0xc5   : > { %1096 = vmatpush3.bf16.msra.mxu1 %v1236_v28  ;;  %1075 = vmatprep.subr.bf16.mxu0 %v1237_v29 }
  0xc6   : > { %1097 = vmatprep.subr.bf16.mxu1 %v1238_v30 }
  0xc8   : > { %1076 = vmatpush3.bf16.msra.mxu0 %v1239_v31 }
  0xc9   : > { %1098 = vmatpush3.bf16.msra.mxu1 %v1240_v32  ;;  %814 = vmatprep.subr.bf16.mxu0 (!%p1037_p13), %v1245_v52 }
  0xcb   : > { %643 = vmatmul.mubr.bf16.vlgmr.msra.gmra.mrb[0].mxu0 %v1001_v35 }
  0xcc   : > { %683 = vmatmul.mubr.bf16.vlgmr.msra.gmra.mrb[0].mxu1 %v1003_v37  ;;  %846 = vmatprep.mubr.bf16.mxu0 (!%p1037_p13), %v1517_v54 }
  0xcd   : > { %815 = vmatpush1.bf16.msra.mxu0 (!%p1037_p13), %v1247_v53 }
  0xce   : > { %816 = vmatprep.subr.bf16.mxu0 (!%p1037_p13), %v1248_v55 }
  0xd1   : > { %817 = vmatpush1.bf16.msra.mxu0 (!%p1037_p13), %v1250_v56 }
  0xd2   : > { %818 = vmatprep.subr.bf16.mxu0 (!%p1037_p13), %v1251_v57 }
  0xd5   : > { %819 = vmatpush1.bf16.msra.mxu0 (!%p1037_p13), %v1253_v58 }
  0xd6   : > { %820 = vmatprep.subr.bf16.mxu0 (!%p1037_p13), %v1254_v59 }
  0xd9   : > { %821 = vmatpush1.bf16.msra.mxu0 (!%p1037_p13), %v1256_v60 }
  0xda   : > { %822 = vmatprep.subr.bf16.mxu0 (!%p1037_p13), %v1257_v61 }
  0xdd   : > { %823 = vmatpush1.bf16.msra.mxu0 (!%p1037_p13), %v1259_v62 }
  0xde   : > { %824 = vmatprep.subr.bf16.mxu0 (!%p1037_p13), %v1260_v63 }
  0xe1   : > { %825 = vmatpush1.bf16.msra.mxu0 (!%p1037_p13), %v1262_v0 }
  0xe2   : > { %826 = vmatprep.subr.bf16.mxu0 (!%p1037_p13), %v1263_v1 }
  0xe5   : > { %827 = vmatpush1.bf16.msra.mxu0 (!%p1037_p13), %v1265_v2 }
  0xe6   : > { %828 = vmatprep.subr.bf16.mxu0 (!%p1037_p13), %v1266_v5 }
  0xe9   : > { %829 = vmatpush1.bf16.msra.mxu0 (!%p1037_p13), %v1268_v7 }
 0x19e   : > { %v1077_v39 = vpop.f32.mrb[0].mxu0 }
 0x19f   : > { %v1099_v40 = vpop.f32.mrb[0].mxu1  ;;  %v1078_v41 = vpop.f32.mrb[1].mxu0 }
 0x1a0   : > { %v1100_v42 = vpop.f32.mrb[1].mxu1  ;;  %v1079_v43 = vadd.f32 %v1078_v41, %v1077_v39  ;;  %v1080_v45 = vpop.f32.mrb[2].mxu0 }
 0x1a1   : > { %v1101_v44 = vadd.f32 %v1100_v42, %v1099_v40  ;;  %v1102_v46 = vpop.f32.mrb[2].mxu1  ;;  %v1081_v48 = vpop.f32.mrb[3].mxu0  ;;  %695 = sbr.rel (%p1037_p13) target bundleno = 651 (0x28b), region = 68 }
 0x1a2   : > { %v1103_v49 = vpop.f32.mrb[3].mxu1 }
 0x1a3   : > { %v685_v50 = vadd.f32 %v1101_v44, %v1079_v43 }
 0x1a5   : > { %v690_v51 = vadd.f32 %v685_v50, %v337_v47 }
 0x1a7   : > { %691 = vst [vmem:[#allocation2] sm:$0xff] %v690_v51 }
 0x1ae   : > { %v696_v3 = vld [vmem:[#allocation2] sm:$0xff] }
 0x1af   : > { %v704_v6 = vadd.f32 %v1038_v4, %v696_v3 }
 0x1b1   : > { %v705_v8 = vpack.c.bf16 %v704_v6, %v704_v6 }
 0x1b3   : > { %847 = vmatmul.mubr.bf16.vlgmr.msra.gmra.mrb[0].mxu0 %v705_v8 }
 0x286   : > { %v848_v16 = vpop.f32.mrb[0].mxu0 }
 0x287   : > { %v849_v17 = vadd.f32 %v848_v16, %v727_v14  ;;  %v850_v18 = vpop.f32.mrb[1].mxu0 }
 0x288   : > { %v851_v19 = vadd.f32 %v850_v18, %v731_v15  ;;  %v852_v20 = vpop.f32.mrb[2].mxu0 }
 0x289   : > { %855 = vst [vmem:[#allocation12] sm:$0xff] %v849_v17  ;;  %v853_v21 = vpop.f32.mrb[3].mxu0 }
 0x28a   : > { %856 = vst [vmem:[#allocation12 + $0x8] sm:$0xff] %v851_v19 }
 0x28b PF: > { %p1149_p2 = scmp.eq.s32.totalorder %s1578_s24, 1  ;;  %s1518_s21 = smov [#allocation12]  }
 0x28c   : > { %s867_s25 = sshll.u32 %s1518_s21, 4  ;;  %s868_s25 = int_to_ptr.vmem [resolvable:$true] %s867_s25 }
 0x28d   : > { %s1413_s26 = scalar_lea.vmem %s868_s25, 256  ;;  %p1420_p8 = scmp.lt.s32.totalorder %s868_s25, %s868_s25 }
 0x28e   : > { %p1414_p3 = scmp.ne.s32.totalorder %s868_s25, %s1413_s26  ;;  %p1421_p10 = scmp.lt.s32.totalorder %s1413_s26, %s1413_s26 }
 0x290   : > { %p1415_p0 = pnand %p1414_p3, %p1149_p2  ;;  %p1422_p12 = por %p1421_p10, %p1420_p8 }
 0x292   : > { %p1416_p6 = pneg %p1415_p0 }
 0x294   : > { %p1423_p9 = pnand %p1422_p12, %p1416_p6 }
 0x296   : > { %1426 = shalt.err (!%p1423_p9)
}
 0x297   : > { %s1427_s18 = scalar_lea.hbm %s1878_s5, 256 }
 0x298   : > { %p1428_p5 = scmp.ne.s32.totalorder %s1878_s5, %s1427_s18  ;;  %p1433_p7 = scmp.lt.u32.totalorder %s1427_s18, %s1878_s5 }
 0x29a   : > { %p1429_p1 = pnand %p1428_p5, %p1149_p2 }
 0x29c   : > { %p1430_p4 = pneg %p1429_p1 }
 0x29e   : > { %p1435_p11 = pnand %p1433_p7, %p1430_p4 }
 0x2a0   : > { %1438 = shalt.err (!%p1435_p11)
}
 0x2a1   : > { %1122 = dma.vmem_to_hbm [thread:$0]  (%p1149_p2), %s868_s25, 256, %s1878_s5, [#allocation5]  }
 0x2a2   : > { %1480 = dma.done.wait (%p1149_p2), [#allocation5], 256  }
 0x2a3   : > { %1482 = vsyncadd (%p1149_p2), [#allocation5], 4294967040 }
 0x2a4 PF: > { %s23_s23 = sadd.s32 1, %s1505_s23   ;;  %s1893_s18 = smov %s1489_s19 }
 0x2a5   : > { %p20_p13 = scmp.ge.s32.totalorder %s23_s23, 4   ;;  %s1894_s19 = smov %s1493_s20 }
 0x2a6   : > { %s1895_s20 = smov %s1688_s7  ;;  %s1896_s21 = smov %s1501_s22 }
 0x2a7   : > { %s1897_s22 = smov %s1899_s16  ;;  %22 = sbr.rel (!%p20_p13) target bundleno = 8 (0x8), region = 111 }
 0x2ae   :  { %880 = vsyncpa [#allocation4], 1 }
 0x2af   :  { %882 = vsyncpa [#allocation4 + $0x1], 1 }
 0x2b0   :  { %883 = vsyncpa [#allocation7], 1 }
 0x2b1   :  { %885 = vsyncpa [#allocation7 + $0x1], 1 }
 0x2b2   :  { %886 = vsyncpa [#allocation10], 1 }
 0x2b3   :  { %887 = vsyncpa [#allocation5], 1 }
 0x2b4   :  { %889 = vsyncpa [#allocation5 + $0x1], 1 }

</bundles_post_ra>
